<compile_context>
chip_gen: v7x
topology: tpu7x:2x2x1
jax: 0.10.0
libtpu: 0.0.40
codegen_flags: <defaults>
</compile_context>

<pallas_src>
import functools

import jax
import jax.numpy as jnp
from jax.experimental import pallas as pl
from jax.experimental.pallas import tpu as pltpu


def _round_up(x, m):
    return ((x + m - 1) // m) * m


def _cdiv(a, b):
    return (a + b - 1) // b


def _bottleneck_kernel(x_ref, w1_ref, b1_ref, w2_ref, b2_ref, o_ref, *,
                       add, nb, mxu_dtype):
    # x_ref : [nb, C1, tm]   activations (spatial on the 128-lane axis)
    # w1_ref: [C_, C1]   b1_ref: [C_, 1]    (BN + conv bias folded, bias in f32)
    # w2_ref: [C2, C_]   b2_ref: [C2, 1]
    # o_ref : [nb, C2, tm]
    w1 = w1_ref[...]
    w2 = w2_ref[...]
    b1 = b1_ref[...]
    b2 = b2_ref[...]
    for n in range(nb):                                   # static unroll, nb small
        x = x_ref[n]                                      # [C1, tm]
        h = jnp.dot(w1, x, preferred_element_type=jnp.float32)
        h = h + b1
        h = h * jax.nn.sigmoid(h)                         # SiLU in f32 (EUP)
        y = jnp.dot(w2, h.astype(mxu_dtype),              # bf16 MXU operands when applicable
                    preferred_element_type=jnp.float32)
        y = y + b2
        y = y * jax.nn.sigmoid(y)                         # SiLU in f32
        if add:
            y = y + x.astype(jnp.float32)                 # residual (c1 == c2)
        o_ref[n] = y.astype(o_ref.dtype)


def _choose_tiling(N, C1, C_, C2, HW, act_bytes, mxu_bytes, *,
                   tm_max=1024, vmem_budget=20 * 1024 * 1024):
    """Pick (nb, tm, n_spatial_tiles, HW_padded)."""
    HW128 = _round_up(HW, 128)
    # Single-buffered resident weights + f32 biases.
    w_footprint = (C_ * C1 + C2 * C_) * mxu_bytes + (C_ + C2) * 4
    # Per (image, lane): double-buffered x/out tiles + ~f32 h/y intermediates.
    per_lane = 2 * (C1 + C2) * act_bytes + (C_ + C2) * 4
    avail = max(vmem_budget - w_footprint, 128 * per_lane)
    tm_cap = max(128, min(tm_max, (avail // per_lane) // 128 * 128))

    # Balanced spatial tiles: avoid padding up to a whole tm on unlucky shapes.
    n_tiles = max(1, _cdiv(HW128, tm_cap))
    tm = _round_up(_cdiv(HW128, n_tiles), 128)

    # Megacore: keep >= 2 parallel grid steps whenever possible.
    if N * n_tiles < 2 and tm >= 256:
        n_tiles = 2
        tm = _round_up(_cdiv(HW128, n_tiles), 128)

    # Batch blocking: amortize per-step overhead for small feature maps while
    # keeping >= 2 grid steps and staying inside the VMEM budget.
    nb = 1
    if n_tiles == 1 and tm <= 512:
        for cand in range(2, N + 1):
            if N % cand != 0:
                continue
            if (N // cand) * n_tiles < 2:
                break
            if cand * tm * per_lane + w_footprint > vmem_budget:
                break
            nb = cand
    return nb, tm, n_tiles, n_tiles * tm


def bottleneck_forward(x_nchw, params, *, shortcut=True, eps=1e-5, tm_max=1024):
    """Bottleneck.forward: x [N, C1, H, W] -> [N, C2, H, W]."""
    p1, p2 = params["cv1"], params["cv2"]
    w1, b1 = p1["w"], p1["b"]
    w2, b2 = p2["w"], p2["b"]

    N, C1, H, W = x_nchw.shape
    C_ = w1.shape[0]
    C2 = w2.shape[0]
    add = bool(shortcut) and (C1 == C2)

    act_dtype = x_nchw.dtype
    # bf16 activations -> bf16 MXU operands (f32 accumulation); else pure f32.
    mxu_dtype = jnp.bfloat16 if act_dtype == jnp.bfloat16 else jnp.float32

    # Fold inference-mode BatchNorm + conv bias:  BN(Wx+b) = (s*W)x + (s*(b-mean)+beta)
    s1 = p1["gamma"] / jnp.sqrt(p1["running_var"] + eps)
    s2 = p2["gamma"] / jnp.sqrt(p2["running_var"] + eps)
    w1m = (w1[:, :, 0, 0] * s1[:, None]).astype(mxu_dtype)                      # [C_, C1]
    b1m = ((b1 - p1["running_mean"]) * s1 + p1["beta"]).astype(jnp.float32).reshape(C_, 1)
    w2m = (w2[:, :, 0, 0] * s2[:, None]).astype(mxu_dtype)                      # [C2, C_]
    b2m = ((b2 - p2["running_mean"]) * s2 + p2["beta"]).astype(jnp.float32).reshape(C2, 1)

    # NCHW -> [N, C, H*W]: free reshape, spatial axis contiguous (lanes).
    HW = H * W
    x3 = x_nchw.reshape(N, C1, HW)

    act_bytes = jnp.dtype(act_dtype).itemsize
    mxu_bytes = jnp.dtype(mxu_dtype).itemsize
    nb, tm, n_tiles, HWp = _choose_tiling(N, C1, C_, C2, HW, act_bytes, mxu_bytes,
                                          tm_max=tm_max)
    if HWp != HW:
        x3 = jnp.pad(x3, ((0, 0), (0, 0), (0, HWp - HW)))

    grid = (N // nb, n_tiles)
    kernel = functools.partial(_bottleneck_kernel, add=add, nb=nb, mxu_dtype=mxu_dtype)

    def run(single_buffer_weights):
        wmode = dict(pipeline_mode=pl.Buffered(1)) if single_buffer_weights else {}
        return pl.pallas_call(
            kernel,
            out_shape=jax.ShapeDtypeStruct((N, C2, HWp), act_dtype),
            grid=grid,
            in_specs=[
                pl.BlockSpec((nb, C1, tm), lambda n, j: (n, 0, j)),   # x tile
                pl.BlockSpec((C_, C1), lambda n, j: (0, 0), **wmode),  # w1 (resident)
                pl.BlockSpec((C_, 1), lambda n, j: (0, 0), **wmode),   # b1
                pl.BlockSpec((C2, C_), lambda n, j: (0, 0), **wmode),  # w2 (resident)
                pl.BlockSpec((C2, 1), lambda n, j: (0, 0), **wmode),   # b2
            ],
            out_specs=pl.BlockSpec((nb, C2, tm), lambda n, j: (n, 0, j)),
            compiler_params=pltpu.CompilerParams(
                dimension_semantics=("parallel", "parallel"),
                vmem_limit_bytes=48 * 1024 * 1024),
        )(x3, w1m, b1m, w2m, b2m)

    try:
        out = run(True)
    except Exception:
        # Fallback if this JAX/Mosaic build rejects single-buffered BlockSpecs.
        out = run(False)

    if HWp != HW:
        out = out[:, :, :HW]
    return out.reshape(N, C2, H, W)


# ---------------------------------------------------------------------------
# Synthetic parameters + pure-JAX reference for correctness checking.
# ---------------------------------------------------------------------------

def _init_dp_conv_params(key, c_in, c_out):
    kw, kb, kg, kbe, km, kv = jax.random.split(key, 6)
    bound = 1.0 / (c_in ** 0.5)
    return {
        "w": jax.random.uniform(kw, (c_out, c_in, 1, 1), jnp.float32, -bound, bound),
        "b": jax.random.uniform(kb, (c_out,), jnp.float32, -bound, bound),
        "gamma": 1.0 + 0.1 * jax.random.normal(kg, (c_out,), jnp.float32),
        "beta": 0.1 * jax.random.normal(kbe, (c_out,), jnp.float32),
        "running_mean": 0.1 * jax.random.normal(km, (c_out,), jnp.float32),
        "running_var": 1.0 + 0.1 * jax.random.uniform(kv, (c_out,), jnp.float32),
    }


def init_bottleneck_params(key, c1, c2, e=0.5):
    c_ = int(c2 * e)
    k1, k2 = jax.random.split(key)
    return {"cv1": _init_dp_conv_params(k1, c1, c_),
            "cv2": _init_dp_conv_params(k2, c_, c2)}


def _dp_conv_ref(x, p, eps=1e-5):
    z = jnp.einsum("nchw,oc->nohw", x, p["w"][:, :, 0, 0])
    z = z + p["b"][None, :, None, None]
    scale = p["gamma"] / jnp.sqrt(p["running_var"] + eps)
    shift = p["beta"] - p["running_mean"] * scale
    z = z * scale[None, :, None, None] + shift[None, :, None, None]
    return z * jax.nn.sigmoid(z)


def _bottleneck_ref(x, params, shortcut=True, eps=1e-5):
    y = _dp_conv_ref(x, params["cv1"], eps)
    y = _dp_conv_ref(y, params["cv2"], eps)
    return x + y if (shortcut and x.shape[1] == y.shape[1]) else y


if __name__ == "__main__":
    key = jax.random.PRNGKey(0)
    k_x, k_p, k_x2, k_p2, k_x3, k_p3 = jax.random.split(key, 6)

    # Config A: f32, shortcut active (c1 == c2), 16x16 spatial.
    N, C1, H, W = 2, 32, 16, 16
    C2 = 32
    x = jax.random.normal(k_x, (N, C1, H, W), jnp.float32)
    params = init_bottleneck_params(k_p, C1, C2, e=0.5)
    out = jax.block_until_ready(bottleneck_forward(x, params, shortcut=True))
    ref = _bottleneck_ref(x, params, shortcut=True)
    assert out.shape == (N, C2, H, W)
    assert float(jnp.max(jnp.abs(out - ref))) < 1e-4

    # Config B: f32, no residual (c1 != c2), non-128-multiple spatial (pad path).
    N2, C1b, Hb, Wb, C2b = 2, 16, 10, 10, 48
    x2 = jax.random.normal(k_x2, (N2, C1b, Hb, Wb), jnp.float32)
    params2 = init_bottleneck_params(k_p2, C1b, C2b, e=0.5)
    out2 = jax.block_until_ready(bottleneck_forward(x2, params2, shortcut=True))
    ref2 = _bottleneck_ref(x2, params2, shortcut=True)
    assert out2.shape == (N2, C2b, Hb, Wb)
    assert float(jnp.max(jnp.abs(out2 - ref2))) < 1e-4

    # Config C: bf16 activations (bf16 MXU path + batch-blocked grid, nb > 1).
    N3, C1c, Hc, Wc, C2c = 4, 64, 8, 8, 64
    x3f = jax.random.normal(k_x3, (N3, C1c, Hc, Wc), jnp.float32)
    params3 = init_bottleneck_params(k_p3, C1c, C2c, e=0.5)
    out3 = jax.block_until_ready(
        bottleneck_forward(x3f.astype(jnp.bfloat16), params3, shortcut=True))
    ref3 = _bottleneck_ref(x3f, params3, shortcut=True)
    assert out3.shape == (N3, C2c, Hc, Wc) and out3.dtype == jnp.bfloat16
    err = float(jnp.max(jnp.abs(out3.astype(jnp.float32) - ref3)))
    scale = float(jnp.max(jnp.abs(ref3)))
    assert err <= 0.05 * (scale + 1.0), (err, scale)

    print("KERNEL_OK")
</pallas_src>

<mosaic_0001>
module attributes {stable_mosaic.version = 11 : i64} {
  func.func @_bottleneck_kernel(%arg0: i32, %arg1: i32, %arg2: memref<1x32x256xf32, #tpu.memory_space<vmem>>, %arg3: memref<16x32xf32, #tpu.memory_space<vmem>>, %arg4: memref<16x1xf32, #tpu.memory_space<vmem>>, %arg5: memref<32x16xf32, #tpu.memory_space<vmem>>, %arg6: memref<32x1xf32, #tpu.memory_space<vmem>>, %arg7: memref<1x32x256xf32, #tpu.memory_space<vmem>>) attributes {dimension_semantics = [#tpu.dimension_semantics<parallel>, #tpu.dimension_semantics<parallel>], iteration_bounds = array<i64: 2, 1>, scalar_prefetch = 0 : i64, scratch_operands = 0 : i64, tpu.core_type = #tpu.core_type<tc>, window_params = [{transform_indices = @transform_0, window_bounds = array<i64: 1, 32, 256>}, {pipeline_mode = #tpu.pipeline_mode<synchronous>, transform_indices = @transform_1, window_bounds = array<i64: 16, 32>}, {pipeline_mode = #tpu.pipeline_mode<synchronous>, transform_indices = @transform_2, window_bounds = array<i64: 16, 1>}, {pipeline_mode = #tpu.pipeline_mode<synchronous>, transform_indices = @transform_3, window_bounds = array<i64: 32, 16>}, {pipeline_mode = #tpu.pipeline_mode<synchronous>, transform_indices = @transform_4, window_bounds = array<i64: 32, 1>}, {transform_indices = @transform_5, window_bounds = array<i64: 1, 32, 256>}]} {
    %c0 = arith.constant 0 : index
    %c0_0 = arith.constant 0 : index
    %0 = vector.load %arg3[%c0, %c0_0] : memref<16x32xf32, #tpu.memory_space<vmem>>, vector<16x32xf32>
    %c0_1 = arith.constant 0 : index
    %c0_2 = arith.constant 0 : index
    %1 = vector.load %arg5[%c0_1, %c0_2] : memref<32x16xf32, #tpu.memory_space<vmem>>, vector<32x16xf32>
    %c0_3 = arith.constant 0 : index
    %c0_4 = arith.constant 0 : index
    %2 = vector.load %arg4[%c0_3, %c0_4] : memref<16x1xf32, #tpu.memory_space<vmem>>, vector<16x1xf32>
    %c0_5 = arith.constant 0 : index
    %c0_6 = arith.constant 0 : index
    %3 = vector.load %arg6[%c0_5, %c0_6] : memref<32x1xf32, #tpu.memory_space<vmem>>, vector<32x1xf32>
    %c0_7 = arith.constant 0 : index
    %c0_8 = arith.constant 0 : index
    %c0_9 = arith.constant 0 : index
    %4 = vector.load %arg2[%c0_7, %c0_8, %c0_9] : memref<1x32x256xf32, #tpu.memory_space<vmem>>, vector<1x32x256xf32>
    %5 = vector.shape_cast %4 : vector<1x32x256xf32> to vector<32x256xf32>
    %cst = arith.constant dense<0.000000e+00> : vector<16x256xf32>
    %6 = tpu.matmul %0, %5, %cst {dimension_numbers = #tpu.dot_dimension_numbers<[1], [0], [0], [1], [0, 0, 1, 1], [], []>} : vector<16x32xf32>, vector<32x256xf32>, vector<16x256xf32> -> vector<16x256xf32>
    %7 = vector.broadcast %2 : vector<16x1xf32> to vector<16x256xf32>
    %8 = arith.addf %6, %7 : vector<16x256xf32>
    %9 = arith.negf %8 : vector<16x256xf32>
    %10 = math.exp %9 : vector<16x256xf32>
    %cst_10 = arith.constant 1.000000e+00 : f32
    %11 = vector.broadcast %cst_10 : f32 to vector<16x256xf32>
    %12 = arith.addf %11, %10 : vector<16x256xf32>
    %13 = arith.divf %11, %12 : vector<16x256xf32>
    %14 = arith.mulf %8, %13 : vector<16x256xf32>
    %cst_11 = arith.constant dense<0.000000e+00> : vector<32x256xf32>
    %15 = tpu.matmul %1, %14, %cst_11 {dimension_numbers = #tpu.dot_dimension_numbers<[1], [0], [0], [1], [0, 0, 1, 1], [], []>} : vector<32x16xf32>, vector<16x256xf32>, vector<32x256xf32> -> vector<32x256xf32>
    %16 = vector.broadcast %3 : vector<32x1xf32> to vector<32x256xf32>
    %17 = arith.addf %15, %16 : vector<32x256xf32>
    %18 = arith.negf %17 : vector<32x256xf32>
    %19 = math.exp %18 : vector<32x256xf32>
    %cst_12 = arith.constant 1.000000e+00 : f32
    %20 = vector.broadcast %cst_12 : f32 to vector<32x256xf32>
    %21 = arith.addf %20, %19 : vector<32x256xf32>
    %22 = arith.divf %20, %21 : vector<32x256xf32>
    %23 = arith.mulf %17, %22 : vector<32x256xf32>
    %24 = arith.addf %23, %5 : vector<32x256xf32>
    %c0_13 = arith.constant 0 : index
    %c0_14 = arith.constant 0 : index
    %c0_15 = arith.constant 0 : index
    %25 = vector.load %arg7[%c0_13, %c0_14, %c0_15] : memref<1x32x256xf32, #tpu.memory_space<vmem>>, vector<1x32x256xf32>
    %26 = vector.shape_cast %25 : vector<1x32x256xf32> to vector<32x256xf32>
    %27 = vector.shape_cast %24 : vector<32x256xf32> to vector<1x32x256xf32>
    tpu.vector_store %arg7[%c0_13, %c0_14, %c0_15], %27 {strides = array<i32>} : memref<1x32x256xf32, #tpu.memory_space<vmem>>, vector<1x32x256xf32>,
    return
  }
  func.func @transform_0(%arg0: i32, %arg1: i32) -> (i32, i32, i32) {
    %c0_i32 = arith.constant 0 : i32
    %c0_i32_0 = arith.constant 0 : i32
    return %arg0, %c0_i32, %arg1 : i32, i32, i32
  }
  func.func @transform_1(%arg0: i32, %arg1: i32) -> (i32, i32) {
    %c0_i32 = arith.constant 0 : i32
    %c0_i32_0 = arith.constant 0 : i32
    %c0_i32_1 = arith.constant 0 : i32
    return %c0_i32, %c0_i32_0 : i32, i32
  }
  func.func @transform_2(%arg0: i32, %arg1: i32) -> (i32, i32) {
    %c0_i32 = arith.constant 0 : i32
    %c0_i32_0 = arith.constant 0 : i32
    %c0_i32_1 = arith.constant 0 : i32
    return %c0_i32, %c0_i32_0 : i32, i32
  }
  func.func @transform_3(%arg0: i32, %arg1: i32) -> (i32, i32) {
    %c0_i32 = arith.constant 0 : i32
    %c0_i32_0 = arith.constant 0 : i32
    %c0_i32_1 = arith.constant 0 : i32
    return %c0_i32, %c0_i32_0 : i32, i32
  }
  func.func @transform_4(%arg0: i32, %arg1: i32) -> (i32, i32) {
    %c0_i32 = arith.constant 0 : i32
    %c0_i32_0 = arith.constant 0 : i32
    %c0_i32_1 = arith.constant 0 : i32
    return %c0_i32, %c0_i32_0 : i32, i32
  }
  func.func @transform_5(%arg0: i32, %arg1: i32) -> (i32, i32, i32) {
    %c0_i32 = arith.constant 0 : i32
    %c0_i32_0 = arith.constant 0 : i32
    return %arg0, %c0_i32, %arg1 : i32, i32, i32
  }
}

module attributes {stable_mosaic.version = 11 : i64} {
  func.func @_bottleneck_kernel(%arg0: i32, %arg1: i32, %arg2: memref<1x32x256xf32, #tpu.memory_space<vmem>>, %arg3: memref<16x32xf32, #tpu.memory_space<vmem>>, %arg4: memref<16x1xf32, #tpu.memory_space<vmem>>, %arg5: memref<32x16xf32, #tpu.memory_space<vmem>>, %arg6: memref<32x1xf32, #tpu.memory_space<vmem>>, %arg7: memref<1x32x256xf32, #tpu.memory_space<vmem>>) attributes {dimension_semantics = [#tpu.dimension_semantics<parallel>, #tpu.dimension_semantics<parallel>], iteration_bounds = array<i64: 2, 1>, scalar_prefetch = 0 : i64, scratch_operands = 0 : i64, tpu.core_type = #tpu.core_type<tc>, window_params = [{transform_indices = @transform_0, window_bounds = array<i64: 1, 32, 256>}, {pipeline_mode = #tpu.pipeline_mode<synchronous>, transform_indices = @transform_1, window_bounds = array<i64: 16, 32>}, {pipeline_mode = #tpu.pipeline_mode<synchronous>, transform_indices = @transform_2, window_bounds = array<i64: 16, 1>}, {pipeline_mode = #tpu.pipeline_mode<synchronous>, transform_indices = @transform_3, window_bounds = array<i64: 32, 16>}, {pipeline_mode = #tpu.pipeline_mode<synchronous>, transform_indices = @transform_4, window_bounds = array<i64: 32, 1>}, {transform_indices = @transform_5, window_bounds = array<i64: 1, 32, 256>}]} {
    %c0 = arith.constant 0 : index
    %c0_0 = arith.constant 0 : index
    %0 = vector.load %arg3[%c0, %c0_0] : memref<16x32xf32, #tpu.memory_space<vmem>>, vector<16x32xf32>
    %c0_1 = arith.constant 0 : index
    %c0_2 = arith.constant 0 : index
    %1 = vector.load %arg5[%c0_1, %c0_2] : memref<32x16xf32, #tpu.memory_space<vmem>>, vector<32x16xf32>
    %c0_3 = arith.constant 0 : index
    %c0_4 = arith.constant 0 : index
    %2 = vector.load %arg4[%c0_3, %c0_4] : memref<16x1xf32, #tpu.memory_space<vmem>>, vector<16x1xf32>
    %c0_5 = arith.constant 0 : index
    %c0_6 = arith.constant 0 : index
    %3 = vector.load %arg6[%c0_5, %c0_6] : memref<32x1xf32, #tpu.memory_space<vmem>>, vector<32x1xf32>
    %c0_7 = arith.constant 0 : index
    %c0_8 = arith.constant 0 : index
    %c0_9 = arith.constant 0 : index
    %4 = vector.load %arg2[%c0_7, %c0_8, %c0_9] : memref<1x32x256xf32, #tpu.memory_space<vmem>>, vector<1x32x256xf32>
    %5 = vector.shape_cast %4 : vector<1x32x256xf32> to vector<32x256xf32>
    %cst = arith.constant dense<0.000000e+00> : vector<16x256xf32>
    %6 = tpu.matmul %0, %5, %cst {dimension_numbers = #tpu.dot_dimension_numbers<[1], [0], [0], [1], [0, 0, 1, 1], [], []>} : vector<16x32xf32>, vector<32x256xf32>, vector<16x256xf32> -> vector<16x256xf32>
    %7 = vector.broadcast %2 : vector<16x1xf32> to vector<16x256xf32>
    %8 = arith.addf %6, %7 : vector<16x256xf32>
    %9 = arith.negf %8 : vector<16x256xf32>
    %10 = math.exp %9 : vector<16x256xf32>
    %cst_10 = arith.constant 1.000000e+00 : f32
    %11 = vector.broadcast %cst_10 : f32 to vector<16x256xf32>
    %12 = arith.addf %11, %10 : vector<16x256xf32>
    %13 = arith.divf %11, %12 : vector<16x256xf32>
    %14 = arith.mulf %8, %13 : vector<16x256xf32>
    %cst_11 = arith.constant dense<0.000000e+00> : vector<32x256xf32>
    %15 = tpu.matmul %1, %14, %cst_11 {dimension_numbers = #tpu.dot_dimension_numbers<[1], [0], [0], [1], [0, 0, 1, 1], [], []>} : vector<32x16xf32>, vector<16x256xf32>, vector<32x256xf32> -> vector<32x256xf32>
    %16 = vector.broadcast %3 : vector<32x1xf32> to vector<32x256xf32>
    %17 = arith.addf %15, %16 : vector<32x256xf32>
    %18 = arith.negf %17 : vector<32x256xf32>
    %19 = math.exp %18 : vector<32x256xf32>
    %cst_12 = arith.constant 1.000000e+00 : f32
    %20 = vector.broadcast %cst_12 : f32 to vector<32x256xf32>
    %21 = arith.addf %20, %19 : vector<32x256xf32>
    %22 = arith.divf %20, %21 : vector<32x256xf32>
    %23 = arith.mulf %17, %22 : vector<32x256xf32>
    %24 = arith.addf %23, %5 : vector<32x256xf32>
    %c0_13 = arith.constant 0 : index
    %c0_14 = arith.constant 0 : index
    %c0_15 = arith.constant 0 : index
    %25 = vector.load %arg7[%c0_13, %c0_14, %c0_15] : memref<1x32x256xf32, #tpu.memory_space<vmem>>, vector<1x32x256xf32>
    %26 = vector.shape_cast %25 : vector<1x32x256xf32> to vector<32x256xf32>
    %27 = vector.shape_cast %24 : vector<32x256xf32> to vector<1x32x256xf32>
    tpu.vector_store %arg7[%c0_13, %c0_14, %c0_15], %27 {strides = array<i32>} : memref<1x32x256xf32, #tpu.memory_space<vmem>>, vector<1x32x256xf32>,
    return
  }
  func.func @transform_0(%arg0: i32, %arg1: i32) -> (i32, i32, i32) {
    %c0_i32 = arith.constant 0 : i32
    %c0_i32_0 = arith.constant 0 : i32
    return %arg0, %c0_i32, %arg1 : i32, i32, i32
  }
  func.func @transform_1(%arg0: i32, %arg1: i32) -> (i32, i32) {
    %c0_i32 = arith.constant 0 : i32
    %c0_i32_0 = arith.constant 0 : i32
    %c0_i32_1 = arith.constant 0 : i32
    return %c0_i32, %c0_i32_0 : i32, i32
  }
  func.func @transform_2(%arg0: i32, %arg1: i32) -> (i32, i32) {
    %c0_i32 = arith.constant 0 : i32
    %c0_i32_0 = arith.constant 0 : i32
    %c0_i32_1 = arith.constant 0 : i32
    return %c0_i32, %c0_i32_0 : i32, i32
  }
  func.func @transform_3(%arg0: i32, %arg1: i32) -> (i32, i32) {
    %c0_i32 = arith.constant 0 : i32
    %c0_i32_0 = arith.constant 0 : i32
    %c0_i32_1 = arith.constant 0 : i32
    return %c0_i32, %c0_i32_0 : i32, i32
  }
  func.func @transform_4(%arg0: i32, %arg1: i32) -> (i32, i32) {
    %c0_i32 = arith.constant 0 : i32
    %c0_i32_0 = arith.constant 0 : i32
    %c0_i32_1 = arith.constant 0 : i32
    return %c0_i32, %c0_i32_0 : i32, i32
  }
  func.func @transform_5(%arg0: i32, %arg1: i32) -> (i32, i32, i32) {
    %c0_i32 = arith.constant 0 : i32
    %c0_i32_0 = arith.constant 0 : i32
    return %arg0, %c0_i32, %arg1 : i32, i32, i32
  }
}

</mosaic_0001>

<bundles_post_ra>
// kernel: tpu_custom_call.1
= control target key start
LH: loop header
LB: loop body
LE: loop exit
PB: predicated region body
PF: predicated region fallthrough
CT: control target
= control target key end

     0   :  { %10 = vsyncpa [#allocation3], 0  ;;  %s1272_s0 = inlined_call_operand.hbm [shape: f32[2,32,256], index: 0, kind: input, shape index: {}]   ;;  %s1273_s1 = inlined_call_operand.vmem [shape: f32[16,32], index: 1, kind: input, shape index: {}]   ;;  %s1274_s2 = inlined_call_operand.vmem [shape: f32[16,1], index: 2, kind: input, shape index: {}]   ;;  %s1275_s3 = inlined_call_operand.vmem [shape: f32[32,16], index: 3, kind: input, shape index: {}]   ;;  %s1276_s4 = inlined_call_operand.vmem [shape: f32[32,1], index: 4, kind: input, shape index: {}]   ;;  %s1277_s5 = inlined_call_operand.hbm [shape: f32[2,32,256], index: 5, kind: output, shape index: {}]  }
   0x1   :  { %12 = vsyncpa [#allocation3 + $0x1], 0 }
   0x2   :  { %13 = vsyncpa [#allocation4], 0 }
   0x3   :  { %15 = vsyncpa [#allocation4 + $0x1], 0  ;;  %s1019_s18 = smov 0   ;;  %s1021_s19 = smov 0  }
   0x4   :  { %s1023_s20 = smov 0   ;;  %s1025_s21 = smov 0  }
   0x5   :  { %s1027_s22 = smov 0   ;;  %s1029_s23 = smov 0  }
   0x6 LB: > { %s702_s24 = sadd.s32 4294967295, %s979_s23   ;;  %s703_s25 = sadd.s32 4294967294, %s979_s23   ;;  %s979_s23 = sphi %s1029_s23, %s21_s23   ;;  %s975_s22 = sphi %s1027_s22, %s1292_s22   ;;  %s971_s21 = sphi %s1025_s21, %s1291_s21   ;;  %s967_s20 = sphi %s1023_s20, %s1290_s20   ;;  %s963_s19 = sphi %s1021_s19, %s1289_s19   ;;  %s959_s18 = sphi %s1019_s18, %s1288_s18  }
   0x7   : > { %s33_s26 = sadd.s32 1, %s975_s22  ;;  %s42_s27 = sadd.s32 1, %s967_s20 }
   0x8   : > { %p35_p0 = scmp.ge.s32.totalorder %s33_s26, 2  ;;  %p49_p1 = scmp.ne.s32.totalorder %s967_s20, %s963_s19 }
   0x9   : > { %p50_p2 = scmp.eq.s32.totalorder %s979_s23, 0  ;;  %p55_p3 = scmp.ne.s32.totalorder %s963_s19, %s959_s18 }
   0xa   : > { %s1294_s26 = smov (%p35_p0, %s33_s26), 0  ;;  %p56_p5 = scmp.eq.s32.totalorder %s702_s24, 0 }
   0xb   : > { %p1060_p4 = por %p50_p2, %p49_p1  ;;  %s37_s29 = ssub.s32 %s975_s22, %s1294_s26 }
   0xc   : > { %p165_p6 = scmp.eq.s32.totalorder %s702_s24, 1  ;;  %p40_p7 = scmp.eq.s32.totalorder %s37_s29, 0 }
   0xd   : > { %p1066_p8 = por %p56_p5, %p55_p3  ;;  %p171_p10 = scmp.eq.s32.totalorder %s703_s25, 1 }
   0xe   : > { %p1070_p9 = por %p165_p6, %p49_p1  ;;  %p761_p13 = scmp.lt.s32.totalorder %s979_s23, 2 }
   0xf   : > { %s1075_s7 = scalar_select %p40_p7, %s967_s20, %s42_s27  }
  0x10   : > { %s1281_s6 = scalar_select %p1070_p9, 1, 0 }
  0x11   : > { %p1077_p11 = por %p171_p10, %p55_p3  ;;  %s203_s9 = sand.u32 1, %s967_s20  }
  0x12   : > { %s706_s10 = sshll.u32 %s203_s9, 6  ;;  %s735_s11 = sshll.u32 %s975_s22, 10 }
  0x13   : > { %s1282_s8 = scalar_select %p1077_p11, 1, 0 }
  0x14   : > { %s1088_s14 = scalar_lea.hbm %s1272_s0, %s735_s11  ;;  %s207_s15 = scalar_lea.vmem [#allocation2], %s706_s10 }
  0x15   : > { %s216_s16 = sshll.u32 %s207_s15, 4  ;;  %p1094_p0 = pnand %p761_p13, %p1060_p4  ;;  %s1090_s16 = int_to_ptr.vmem [resolvable:$true] %s216_s16 }
  0x16   : > { %s1099_s24 = scalar_lea.sflag [#allocation3], %s203_s9  ;;  %s867_s25 = scalar_lea.hbm %s1088_s14, 1024 }
  0x17   : > { %p868_p2 = scmp.ne.s32.totalorder %s1088_s14, %s867_s25  ;;  %p869_p3 = pneg %p1094_p0 }
  0x18   : > { %s872_s28 = scalar_lea.hbm %s1272_s0, 2048  ;;  %p873_p4 = scmp.lt.u32.totalorder %s1088_s14, %s1272_s0 }
  0x19   : > { %p870_p5 = pnand %p869_p3, %p868_p2  ;;  %p874_p7 = scmp.lt.u32.totalorder %s872_s28, %s867_s25 }
  0x1a   : > { %p876_p13 = scmp.lt.u32.totalorder %s867_s25, %s1088_s14 }
  0x1b   : > { %p871_p6 = pneg %p870_p5  ;;  %p875_p10 = por %p874_p7, %p873_p4 }
  0x1d   : > { %p877_p12 = por %p876_p13, %p875_p10 }
  0x1f   : > { %p878_p1 = pnand %p877_p12, %p871_p6 }
  0x21   : > { %881 = shalt.err (!%p878_p1)
}
  0x22   : > { %s882_s9 = scalar_lea.vmem %s1090_s16, 1024  ;;  %s981_s12 = smov [#allocation2]  }
  0x23   : > { %p883_p2 = scmp.ne.s32.totalorder %s1090_s16, %s882_s9  ;;  %s887_s13 = sshll.u32 %s981_s12, 4  ;;  %s888_s13 = int_to_ptr.vmem [resolvable:$false] %s887_s13 }
  0x24   : > { %s889_s15 = scalar_lea.vmem %s888_s13, 2048  ;;  %p890_p9 = scmp.lt.s32.totalorder %s1090_s16, %s888_s13 }
  0x25   : > { %p885_p5 = pnand %p883_p2, %p869_p3  ;;  %p891_p4 = scmp.lt.s32.totalorder %s889_s15, %s882_s9 }
  0x27   : > { %p886_p11 = pneg %p885_p5  ;;  %p892_p7 = por %p891_p4, %p890_p9 }
  0x29   : > { %p893_p10 = pnand %p892_p7, %p886_p11 }
  0x2b   : > { %896 = shalt.err (!%p893_p10)
}
  0x2c   : > { %s982_s25 = smov 256   ;;  %s983_s27 = smov 16  }
  0x2d   : > { %756 = dma.hbm_to_vmem [thread:$0]  (!%p1094_p0), %s1088_s14, 1024, %s1090_s16, %s1099_s24, %s982_s25, %s982_s25, %s983_s27  }
  0x2e   : > { %p224_p12 = scmp.lt.s32.totalorder %s979_s23, 3  ;;  %p1284_p1 = scmp.ge.s32.totalorder %s979_s23, 1 }
  0x30   : > { %p225_p3 = pnand %p1284_p1, %p224_p12 }
  0x31   : > { %s1131_s29 = sand.u32 (!%p225_p3), 1, %s963_s19  }
  0x32   : > { %228 = sbr.rel (%p225_p3) target bundleno = 596 (0x254), region = 40  ;;  %s710_s28 = sshll.u32 (!%p225_p3), %s1131_s29, 6 }
  0x33   : > { %s231_s10 = scalar_lea.sflag (!%p225_p3), [#allocation3], %s1131_s29  ;;  %s234_s11 = scalar_lea.vmem (!%p225_p3), [#allocation2], %s710_s28 }
  0x39   : > { %950 = dma.done.wait (%p1066_p8), %s231_s10, 1024  }
  0x3a   : > { %952 = vsyncadd (%p1066_p8), %s231_s10, 4294966272  ;;  %v984_v0 = vmov 0.0   ;;  %v985_v1 = vmov 0   ;;  %v1143_v2 = vld [vmem:[%s234_s11 + $0x8] sm:$0xff]  ;;  %v1145_v3 = vld [vmem:[%s234_s11 + $0x18] sm:$0xff]  ;;  %vm293_vm0 = vcmask 261120  }
  0x3b   : > { %364 = vmatprep.mubr.f32.mxu0 %v984_v0  ;;  %817 = vset.pattern.permute.xlu0 %v985_v1  ;;  %v1147_v4 = vld [vmem:[%s234_s11] sm:$0xff]  ;;  %v737_v5 = vpack.c.bf16 %v1145_v3, %v1143_v2  ;;  %v1151_v6 = vld [vmem:[%s234_s11 + $0x10] sm:$0xff]  ;;  %v1153_v7 = vld [vmem:[%s234_s11 + $0x28] sm:$0xff]  ;;  %vm425_vm1 = vcmask 130048   ;;  %s260_s10 = scalar_lea.vmem [#allocation5], %s710_s28  ;;  %s736_s28 = sshll.u32 %s971_s21, 10 }
  0x3c   : > { %502 = vmatprep.mubr.f32.mxu1 %v984_v0  ;;  %818 = vset.pattern.permute.xlu1 %v985_v1  ;;  %v1155_v8 = vld [vmem:[%s234_s11 + $0x38] sm:$0xff]  ;;  %v739_v9 = vpack.c.bf16 %v1151_v6, %v1147_v4  ;;  %v1161_v11 = vld [vmem:[%s234_s11 + $0x20] sm:$0xff]  ;;  %v1163_v12 = vld [vmem:[%s234_s11 + $0x30] sm:$0xff]  ;;  %s615_s11 = sshll.u32 %s260_s10, 4  ;;  %s1220_s16 = scalar_lea.hbm %s1277_s5, %s736_s28  ;;  %s1222_s11 = int_to_ptr.vmem [resolvable:$true] %s615_s11 }
  0x3d   : > { %v741_v10 = vpack.c.bf16 %v1155_v8, %v1153_v7  ;;  %738 = vmatprep.subr.bf16.mxu0 %v737_v5  ;;  %v269_v13 = vld [vmem:[%s1274_s2] sm:$0xff]  ;;  %v743_v14 = vpack.c.bf16 %v1163_v12, %v1161_v11  ;;  %v270_v15 = vld [vmem:[%s1274_s2 + $0x8] sm:$0xff]  ;;  %v273_v17 = vld [vmem:[%s1276_s4 + $0x10] sm:$0xff]  ;;  %s600_s21 = scalar_lea.sflag [#allocation4], %s1131_s29  ;;  %s897_s17 = scalar_lea.vmem %s1222_s11, 1024 }
  0x3e   : > { %740 = vmatpush1.bf16.msra.mxu0 %v739_v9  ;;  %285 = vperm.xlu0 %817, %v269_v13   ;;  %v263_v16 = vld [vmem:[%s1273_s1] sm:$0xff]  ;;  %v264_v18 = vld [vmem:[%s1273_s1 + $0x8] sm:$0xff]  ;;  %v274_v21 = vld [vmem:[%s1276_s4 + $0x18] sm:$0xff]  ;;  %p898_p8 = scmp.ne.s32.totalorder %s1222_s11, %s897_s17  ;;  %p1285_p9 = scmp.ne.s32.totalorder %s1281_s6, 0 }
  0x3f   : > { %742 = vmatprep.subr.bf16.mxu0 %v741_v10  ;;  %v271_v19 = vld [vmem:[%s1276_s4] sm:$0xff]  ;;  %v272_v20 = vld [vmem:[%s1276_s4 + $0x8] sm:$0xff]  ;;  %v267_v56 = vld [vmem:[%s1275_s3 + $0x10] sm:$0xff]  ;;  %s986_s24 = smov [#allocation5]  }
  0x40   : > { %407 = vperm.xlu1 %818, %v271_v19   ;;  %v265_v54 = vld [vmem:[%s1275_s3] sm:$0xff]  ;;  %v266_v55 = vld [vmem:[%s1275_s3 + $0x8] sm:$0xff]  ;;  %v268_v57 = vld [vmem:[%s1275_s3 + $0x18] sm:$0xff]  ;;  %p899_p11 = pnand %p898_p8, %p1285_p9  ;;  %s901_s9 = sshll.u32 %s986_s24, 4  ;;  %s902_s9 = int_to_ptr.vmem [resolvable:$false] %s901_s9 }
  0x41   : > { %s903_s12 = scalar_lea.vmem %s902_s9, 2048  ;;  %p904_p6 = scmp.lt.s32.totalorder %s1222_s11, %s902_s9 }
  0x42   : > { %744 = vmatpush1.bf16.msra.mxu0 %v743_v14  ;;  %290 = vperm.xlu0 %817, %v270_v15   ;;  %p900_p0 = pneg %p899_p11  ;;  %p905_p13 = scmp.lt.s32.totalorder %s903_s12, %s897_s17 }
  0x44   : > { %412 = vperm.xlu1 %818, %v272_v20   ;;  %p906_p2 = por %p905_p13, %p904_p6 }
  0x45   : > { %712 = vmatmul.mubr.msk.f32.vlgmr.msra.gmra.mrb[0].mxu0 %vm293_vm0, %v263_v16 }
  0x46   : > { %370 = vmatprep.mubr.f32.mxu0 %v984_v0  ;;  %417 = vperm.xlu0 %817, %v273_v17   ;;  %p907_p5 = pnand %p906_p2, %p900_p0 }
  0x48   : > { %422 = vperm.xlu1 %818, %v274_v21  }
  0x49   : > { %713 = vmatmul.mubr.msk.f32.gmra.mrb[2].mxu0 %vm293_vm0, %v264_v18 }
  0xbd   : > { %v286_v22 = vpop.permute.xlu0 %285 }
  0xbf   : > { %v408_v58 = vpop.permute.xlu1 %407 }
  0xc1   : > { %v291_v28 = vpop.permute.xlu0 %290 }
  0xc3   : > { %v413_v1 = vpop.permute.xlu1 %412 }
  0xc5   : > { %v418_v15 = vpop.permute.xlu0 %417 }
 0x118   : > { %v366_v23 = vpop.f32.mrb[0].mxu0 }
 0x119   : > { %v367_v24 = vadd.f32 %v366_v23, %v286_v22  ;;  %v368_v25 = vpop.f32.mrb[1].mxu0 }
 0x11a   : > { %v369_v26 = vadd.f32 %v368_v25, %v286_v22  ;;  %v423_v22 = vpop.permute.xlu1 %422 }
 0x11b   : > { %v714_v27 = vmul.f32 -1.442695, %v367_v24 }
 0x11c   : > { %v715_v29 = vmul.f32 -1.442695, %v369_v26  ;;  %v372_v30 = vpop.f32.mrb[2].mxu0 }
 0x11d   : > { %819 = vpow2.f32 %v714_v27  ;;  %v373_v31 = vadd.f32 %v372_v30, %v291_v28  ;;  %v374_v32 = vpop.f32.mrb[3].mxu0 }
 0x11e   : > { %821 = vpow2.f32 %v715_v29  ;;  %v375_v33 = vadd.f32 %v374_v32, %v291_v28 }
 0x11f   : > { %v716_v34 = vmul.f32 -1.442695, %v373_v31 }
 0x120   : > { %v717_v35 = vmul.f32 -1.442695, %v375_v33 }
 0x121   : > { %823 = vpow2.f32 %v716_v34 }
 0x122   : > { %825 = vpow2.f32 %v717_v35 }
 0x127   : > { %v820_v36 = vpop.eup %819 }
 0x128   : > { %v822_v37 = vpop.eup %821  ;;  %v389_v38 = vadd.f32 1.0, %v820_v36 }
 0x129   : > { %v390_v39 = vadd.f32 1.0, %v822_v37 }
 0x12a   : > { %827 = vrcp.f32 %v389_v38 }
 0x12b   : > { %v824_v40 = vpop.eup %823  ;;  %829 = vrcp.f32 %v390_v39 }
 0x12c   : > { %v826_v41 = vpop.eup %825  ;;  %v391_v42 = vadd.f32 1.0, %v824_v40 }
 0x12d   : > { %v392_v43 = vadd.f32 1.0, %v826_v41 }
 0x12e   : > { %831 = vrcp.f32 %v391_v42 }
 0x12f   : > { %833 = vrcp.f32 %v392_v43 }
 0x134   : > { %v828_v44 = vpop.eup %827 }
 0x135   : > { %v830_v45 = vpop.eup %829  ;;  %v401_v48 = vmul.f32 %v828_v44, %v367_v24 }
 0x136   : > { %v402_v50 = vmul.f32 %v830_v45, %v369_v26 }
 0x138   : > { %v832_v46 = vpop.eup %831 }
 0x139   : > { %v834_v47 = vpop.eup %833  ;;  %v403_v49 = vmul.f32 %v832_v46, %v373_v31 }
 0x13a   : > { %v404_v51 = vmul.f32 %v834_v47, %v375_v33 }
 0x13b   : > { %v747_v52 = vpack.c.bf16 %v403_v49, %v401_v48 }
 0x13c   : > { %v745_v53 = vpack.c.bf16 %v404_v51, %v402_v50 }
 0x13e   : > { %746 = vmatprep.subr.bf16.mxu1 %v745_v53 }
 0x13f   : > { %748 = vmatpush1.bf16.msra.mxu1 %v747_v52 }
 0x142   : > { %718 = vmatmul.mubr.msk.f32.vlgmr.msra.gmra.mrb[0].mxu1 %vm425_vm1, %v265_v54 }
 0x143   : > { %508 = vmatprep.mubr.f32.mxu1 %v984_v0 }
 0x146   : > { %719 = vmatmul.mubr.msk.f32.gmra.mrb[2].mxu1 %vm425_vm1, %v266_v55 }
 0x147   : > { %514 = vmatprep.mubr.f32.mxu1 %v984_v0 }
 0x14a   : > { %720 = vmatmul.mubr.msk.f32.gmra.mrb[4].mxu1 %vm425_vm1, %v267_v56 }
 0x14b   : > { %520 = vmatprep.mubr.f32.mxu1 %v984_v0 }
 0x14e   : > { %721 = vmatmul.mubr.msk.f32.gmra.mrb[6].mxu1 %vm425_vm1, %v268_v57 }
 0x215   : > { %v504_v59 = vpop.f32.mrb[0].mxu1 }
 0x216   : > { %v505_v60 = vadd.f32 %v504_v59, %v408_v58  ;;  %v506_v61 = vpop.f32.mrb[1].mxu1 }
 0x217   : > { %v507_v62 = vadd.f32 %v506_v61, %v408_v58 }
 0x218   : > { %v722_v63 = vmul.f32 -1.442695, %v505_v60 }
 0x219   : > { %v723_v5 = vmul.f32 -1.442695, %v507_v62  ;;  %v510_v9 = vpop.f32.mrb[2].mxu1 }
 0x21a   : > { %835 = vpow2.f32 %v722_v63  ;;  %v511_v10 = vadd.f32 %v510_v9, %v413_v1  ;;  %v512_v13 = vpop.f32.mrb[3].mxu1 }
 0x21b   : > { %837 = vpow2.f32 %v723_v5  ;;  %v513_v14 = vadd.f32 %v512_v13, %v413_v1 }
 0x21c   : > { %v724_v0 = vmul.f32 -1.442695, %v511_v10 }
 0x21d   : > { %v725_v16 = vmul.f32 -1.442695, %v513_v14  ;;  %v516_v17 = vpop.f32.mrb[4].mxu1 }
 0x21e   : > { %839 = vpow2.f32 %v724_v0  ;;  %v517_v18 = vadd.f32 %v516_v17, %v418_v15  ;;  %v518_v19 = vpop.f32.mrb[5].mxu1 }
 0x21f   : > { %841 = vpow2.f32 %v725_v16  ;;  %v519_v20 = vadd.f32 %v518_v19, %v418_v15 }
 0x220   : > { %v726_v21 = vmul.f32 -1.442695, %v517_v18 }
 0x221   : > { %v727_v23 = vmul.f32 -1.442695, %v519_v20  ;;  %v522_v24 = vpop.f32.mrb[6].mxu1 }
 0x222   : > { %843 = vpow2.f32 %v726_v21  ;;  %v523_v25 = vadd.f32 %v522_v24, %v423_v22  ;;  %v524_v26 = vpop.f32.mrb[7].mxu1 }
 0x223   : > { %845 = vpow2.f32 %v727_v23  ;;  %v525_v27 = vadd.f32 %v524_v26, %v423_v22 }
 0x224   : > { %v836_v28 = vpop.eup %835  ;;  %v728_v29 = vmul.f32 -1.442695, %v523_v25 }
 0x225   : > { %v838_v30 = vpop.eup %837  ;;  %v551_v31 = vadd.f32 1.0, %v836_v28  ;;  %v729_v32 = vmul.f32 -1.442695, %v525_v27 }
 0x226   : > { %v552_v33 = vadd.f32 1.0, %v838_v30  ;;  %847 = vpow2.f32 %v728_v29 }
 0x227   : > { %849 = vrcp.f32 %v551_v31 }
 0x228   : > { %v840_v34 = vpop.eup %839  ;;  %851 = vrcp.f32 %v552_v33 }
 0x229   : > { %v842_v35 = vpop.eup %841  ;;  %v553_v36 = vadd.f32 1.0, %v840_v34  ;;  %853 = vpow2.f32 %v729_v32 }
 0x22a   : > { %v554_v37 = vadd.f32 1.0, %v842_v35 }
 0x22b   : > { %855 = vrcp.f32 %v553_v36 }
 0x22c   : > { %v844_v38 = vpop.eup %843  ;;  %857 = vrcp.f32 %v554_v37 }
 0x22d   : > { %v846_v39 = vpop.eup %845  ;;  %v555_v40 = vadd.f32 1.0, %v844_v38 }
 0x22e   : > { %v556_v41 = vadd.f32 1.0, %v846_v39 }
 0x22f   : > { %859 = vrcp.f32 %v555_v40 }
 0x230   : > { %v848_v42 = vpop.eup %847  ;;  %861 = vrcp.f32 %v556_v41 }
 0x231   : > { %v850_v43 = vpop.eup %849  ;;  %v557_v44 = vadd.f32 1.0, %v848_v42 }
 0x232   : > { %v852_v45 = vpop.eup %851  ;;  %v575_v46 = vmul.f32 %v850_v43, %v505_v60 }
 0x233   : > { %v854_v47 = vpop.eup %853  ;;  %v576_v48 = vmul.f32 %v852_v45, %v507_v62  ;;  %863 = vrcp.f32 %v557_v44 }
 0x234   : > { %v583_v49 = vadd.f32 %v575_v46, %v1147_v4  ;;  %v558_v50 = vadd.f32 1.0, %v854_v47 }
 0x235   : > { %v856_v51 = vpop.eup %855  ;;  %v584_v52 = vadd.f32 %v576_v48, %v1143_v2 }
 0x236   : > { %v858_v53 = vpop.eup %857  ;;  %591 = vst [vmem:[%s260_s10] sm:$0xff] %v583_v49  ;;  %v577_v54 = vmul.f32 %v856_v51, %v511_v10  ;;  %865 = vrcp.f32 %v558_v50 }
 0x237   : > { %592 = vst [vmem:[%s260_s10 + $0x8] sm:$0xff] %v584_v52  ;;  %v578_v55 = vmul.f32 %v858_v53, %v513_v14 }
 0x238   : > { %v585_v56 = vadd.f32 %v577_v54, %v1151_v6 }
 0x239   : > { %v860_v57 = vpop.eup %859  ;;  %v586_v58 = vadd.f32 %v578_v55, %v1145_v3 }
 0x23a   : > { %v862_v59 = vpop.eup %861  ;;  %593 = vst [vmem:[%s260_s10 + $0x10] sm:$0xff] %v585_v56  ;;  %v579_v4 = vmul.f32 %v860_v57, %v517_v18 }
 0x23b   : > { %594 = vst [vmem:[%s260_s10 + $0x18] sm:$0xff] %v586_v58  ;;  %v580_v60 = vmul.f32 %v862_v59, %v519_v20 }
 0x23c   : > { %v587_v2 = vadd.f32 %v579_v4, %v1161_v11 }
 0x23d   : > { %v864_v61 = vpop.eup %863  ;;  %v588_v62 = vadd.f32 %v580_v60, %v1153_v7 }
 0x23e   : > { %595 = vst [vmem:[%s260_s10 + $0x20] sm:$0xff] %v587_v2  ;;  %v581_v63 = vmul.f32 %v864_v61, %v523_v25 }
 0x23f   : > { %596 = vst [vmem:[%s260_s10 + $0x28] sm:$0xff] %v588_v62 }
 0x240   : > { %v866_v6 = vpop.eup %865  ;;  %v589_v3 = vadd.f32 %v581_v63, %v1163_v12 }
 0x241   : > { %v582_v1 = vmul.f32 %v866_v6, %v525_v27 }
 0x242   : > { %597 = vst [vmem:[%s260_s10 + $0x30] sm:$0xff] %v589_v3 }
 0x243   : > { %v590_v7 = vadd.f32 %v582_v1, %v1155_v8 }
 0x245   : > { %598 = vst [vmem:[%s260_s10 + $0x38] sm:$0xff] %v590_v7 }
 0x246   : > { %910 = shalt.err (!%p907_p5)
}
 0x247   : > { %s911_s13 = scalar_lea.hbm %s1220_s16, 1024  ;;  %s915_s27 = scalar_lea.hbm %s1277_s5, 2048 }
 0x248   : > { %p912_p4 = scmp.ne.s32.totalorder %s1220_s16, %s911_s13  ;;  %p916_p12 = scmp.lt.u32.totalorder %s1220_s16, %s1277_s5 }
 0x249   : > { %p917_p1 = scmp.lt.u32.totalorder %s915_s27, %s911_s13  ;;  %p919_p8 = scmp.lt.u32.totalorder %s911_s13, %s1220_s16 }
 0x24a   : > { %p913_p7 = pnand %p912_p4, %p1285_p9 }
 0x24b   : > { %p918_p3 = por %p917_p1, %p916_p12 }
 0x24c   : > { %p914_p10 = pneg %p913_p7 }
 0x24d   : > { %p920_p11 = por %p919_p8, %p918_p3 }
 0x24f   : > { %p921_p0 = pnand %p920_p11, %p914_p10 }
 0x251   : > { %924 = shalt.err (!%p921_p0)
}
 0x252   : > { %s987_s30 = smov 256   ;;  %s988_s14 = smov 16  }
 0x253   : > { %751 = dma.vmem_to_hbm [thread:$0]  (%p1285_p9), %s1222_s11, 1024, %s1220_s16, %s600_s21, %s987_s30, %s987_s30, %s988_s14  }
 0x254 PF: > { %s630_s17 = sand.u32 1, %s959_s18   ;;  %p1286_p6 = scmp.ne.s32.totalorder %s1282_s8, 0 }
 0x255   : > { %p1287_p13 = scmp.ge.s32.totalorder %s979_s23, 2  ;;  %s631_s24 = scalar_lea.sflag [#allocation4], %s630_s17 }
 0x257   : > { %p758_p2 = pnand %p1287_p13, %p1286_p6 }
 0x259   : > { %954 = dma.done.wait (!%p758_p2), %s631_s24, 1024  }
 0x25a   : > { %956 = vsyncadd (!%p758_p2), %s631_s24, 4294966272  ;;  %s21_s23 = sadd.s32 1, %s979_s23   ;;  %s1288_s18 = smov %s963_s19 }
 0x25b   : > { %p18_p5 = scmp.ge.s32.totalorder %s21_s23, 4   ;;  %s1289_s19 = smov %s967_s20 }
 0x25c   : > { %s1290_s20 = smov %s1075_s7  ;;  %s1291_s21 = smov %s975_s22 }
 0x25d   : > { %s1292_s22 = smov %s1294_s26  ;;  %20 = sbr.rel (!%p18_p5) target bundleno = 6 (0x6), region = 85 }
 0x264   :  { %636 = vsyncpa [#allocation3], 1 }
 0x265   :  { %638 = vsyncpa [#allocation3 + $0x1], 1 }
 0x266   :  { %639 = vsyncpa [#allocation4], 1 }
 0x267   :  { %641 = vsyncpa [#allocation4 + $0x1], 1 }

// kernel: tpu_custom_call.1
= control target key start
LH: loop header
LB: loop body
LE: loop exit
PB: predicated region body
PF: predicated region fallthrough
CT: control target
= control target key end

     0   :  { %10 = vsyncpa [#allocation3], 0  ;;  %s1272_s0 = inlined_call_operand.hbm [shape: f32[2,32,256], index: 0, kind: input, shape index: {}]   ;;  %s1273_s1 = inlined_call_operand.vmem [shape: f32[16,32], index: 1, kind: input, shape index: {}]   ;;  %s1274_s2 = inlined_call_operand.vmem [shape: f32[16,1], index: 2, kind: input, shape index: {}]   ;;  %s1275_s3 = inlined_call_operand.vmem [shape: f32[32,16], index: 3, kind: input, shape index: {}]   ;;  %s1276_s4 = inlined_call_operand.vmem [shape: f32[32,1], index: 4, kind: input, shape index: {}]   ;;  %s1277_s5 = inlined_call_operand.hbm [shape: f32[2,32,256], index: 5, kind: output, shape index: {}]  }
   0x1   :  { %12 = vsyncpa [#allocation3 + $0x1], 0 }
   0x2   :  { %13 = vsyncpa [#allocation4], 0 }
   0x3   :  { %15 = vsyncpa [#allocation4 + $0x1], 0  ;;  %s1019_s18 = smov 0   ;;  %s1021_s19 = smov 0  }
   0x4   :  { %s1023_s20 = smov 0   ;;  %s1025_s21 = smov 0  }
   0x5   :  { %s1027_s22 = smov 0   ;;  %s1029_s23 = smov 0  }
   0x6 LB: > { %s702_s24 = sadd.s32 4294967295, %s979_s23   ;;  %s703_s25 = sadd.s32 4294967294, %s979_s23   ;;  %s979_s23 = sphi %s1029_s23, %s21_s23   ;;  %s975_s22 = sphi %s1027_s22, %s1292_s22   ;;  %s971_s21 = sphi %s1025_s21, %s1291_s21   ;;  %s967_s20 = sphi %s1023_s20, %s1290_s20   ;;  %s963_s19 = sphi %s1021_s19, %s1289_s19   ;;  %s959_s18 = sphi %s1019_s18, %s1288_s18  }
   0x7   : > { %s33_s26 = sadd.s32 1, %s975_s22  ;;  %s42_s27 = sadd.s32 1, %s967_s20 }
   0x8   : > { %p35_p0 = scmp.ge.s32.totalorder %s33_s26, 2  ;;  %p49_p1 = scmp.ne.s32.totalorder %s967_s20, %s963_s19 }
   0x9   : > { %p50_p2 = scmp.eq.s32.totalorder %s979_s23, 0  ;;  %p55_p3 = scmp.ne.s32.totalorder %s963_s19, %s959_s18 }
   0xa   : > { %s1294_s26 = smov (%p35_p0, %s33_s26), 0  ;;  %p56_p5 = scmp.eq.s32.totalorder %s702_s24, 0 }
   0xb   : > { %p1060_p4 = por %p50_p2, %p49_p1  ;;  %s37_s29 = ssub.s32 %s975_s22, %s1294_s26 }
   0xc   : > { %p165_p6 = scmp.eq.s32.totalorder %s702_s24, 1  ;;  %p40_p7 = scmp.eq.s32.totalorder %s37_s29, 0 }
   0xd   : > { %p1066_p8 = por %p56_p5, %p55_p3  ;;  %p171_p10 = scmp.eq.s32.totalorder %s703_s25, 1 }
   0xe   : > { %p1070_p9 = por %p165_p6, %p49_p1  ;;  %p761_p13 = scmp.lt.s32.totalorder %s979_s23, 2 }
   0xf   : > { %s1075_s7 = scalar_select %p40_p7, %s967_s20, %s42_s27  }
  0x10   : > { %s1281_s6 = scalar_select %p1070_p9, 1, 0 }
  0x11   : > { %p1077_p11 = por %p171_p10, %p55_p3  ;;  %s203_s9 = sand.u32 1, %s967_s20  }
  0x12   : > { %s706_s10 = sshll.u32 %s203_s9, 6  ;;  %s735_s11 = sshll.u32 %s975_s22, 10 }
  0x13   : > { %s1282_s8 = scalar_select %p1077_p11, 1, 0 }
  0x14   : > { %s1088_s14 = scalar_lea.hbm %s1272_s0, %s735_s11  ;;  %s207_s15 = scalar_lea.vmem [#allocation2], %s706_s10 }
  0x15   : > { %s216_s16 = sshll.u32 %s207_s15, 4  ;;  %p1094_p0 = pnand %p761_p13, %p1060_p4  ;;  %s1090_s16 = int_to_ptr.vmem [resolvable:$true] %s216_s16 }
  0x16   : > { %s1099_s24 = scalar_lea.sflag [#allocation3], %s203_s9  ;;  %s867_s25 = scalar_lea.hbm %s1088_s14, 1024 }
  0x17   : > { %p868_p2 = scmp.ne.s32.totalorder %s1088_s14, %s867_s25  ;;  %p869_p3 = pneg %p1094_p0 }
  0x18   : > { %s872_s28 = scalar_lea.hbm %s1272_s0, 2048  ;;  %p873_p4 = scmp.lt.u32.totalorder %s1088_s14, %s1272_s0 }
  0x19   : > { %p870_p5 = pnand %p869_p3, %p868_p2  ;;  %p874_p7 = scmp.lt.u32.totalorder %s872_s28, %s867_s25 }
  0x1a   : > { %p876_p13 = scmp.lt.u32.totalorder %s867_s25, %s1088_s14 }
  0x1b   : > { %p871_p6 = pneg %p870_p5  ;;  %p875_p10 = por %p874_p7, %p873_p4 }
  0x1d   : > { %p877_p12 = por %p876_p13, %p875_p10 }
  0x1f   : > { %p878_p1 = pnand %p877_p12, %p871_p6 }
  0x21   : > { %881 = shalt.err (!%p878_p1)
}
  0x22   : > { %s882_s9 = scalar_lea.vmem %s1090_s16, 1024  ;;  %s981_s12 = smov [#allocation2]  }
  0x23   : > { %p883_p2 = scmp.ne.s32.totalorder %s1090_s16, %s882_s9  ;;  %s887_s13 = sshll.u32 %s981_s12, 4  ;;  %s888_s13 = int_to_ptr.vmem [resolvable:$false] %s887_s13 }
  0x24   : > { %s889_s15 = scalar_lea.vmem %s888_s13, 2048  ;;  %p890_p9 = scmp.lt.s32.totalorder %s1090_s16, %s888_s13 }
  0x25   : > { %p885_p5 = pnand %p883_p2, %p869_p3  ;;  %p891_p4 = scmp.lt.s32.totalorder %s889_s15, %s882_s9 }
  0x27   : > { %p886_p11 = pneg %p885_p5  ;;  %p892_p7 = por %p891_p4, %p890_p9 }
  0x29   : > { %p893_p10 = pnand %p892_p7, %p886_p11 }
  0x2b   : > { %896 = shalt.err (!%p893_p10)
}
  0x2c   : > { %s982_s25 = smov 256   ;;  %s983_s27 = smov 16  }
  0x2d   : > { %756 = dma.hbm_to_vmem [thread:$0]  (!%p1094_p0), %s1088_s14, 1024, %s1090_s16, %s1099_s24, %s982_s25, %s982_s25, %s983_s27  }
  0x2e   : > { %p224_p12 = scmp.lt.s32.totalorder %s979_s23, 3  ;;  %p1284_p1 = scmp.ge.s32.totalorder %s979_s23, 1 }
  0x30   : > { %p225_p3 = pnand %p1284_p1, %p224_p12 }
  0x31   : > { %s1131_s29 = sand.u32 (!%p225_p3), 1, %s963_s19  }
  0x32   : > { %228 = sbr.rel (%p225_p3) target bundleno = 596 (0x254), region = 40  ;;  %s710_s28 = sshll.u32 (!%p225_p3), %s1131_s29, 6 }
  0x33   : > { %s231_s10 = scalar_lea.sflag (!%p225_p3), [#allocation3], %s1131_s29  ;;  %s234_s11 = scalar_lea.vmem (!%p225_p3), [#allocation2], %s710_s28 }
  0x39   : > { %950 = dma.done.wait (%p1066_p8), %s231_s10, 1024  }
  0x3a   : > { %952 = vsyncadd (%p1066_p8), %s231_s10, 4294966272  ;;  %v984_v0 = vmov 0.0   ;;  %v985_v1 = vmov 0   ;;  %v1143_v2 = vld [vmem:[%s234_s11 + $0x8] sm:$0xff]  ;;  %v1145_v3 = vld [vmem:[%s234_s11 + $0x18] sm:$0xff]  ;;  %vm293_vm0 = vcmask 261120  }
  0x3b   : > { %364 = vmatprep.mubr.f32.mxu0 %v984_v0  ;;  %817 = vset.pattern.permute.xlu0 %v985_v1  ;;  %v1147_v4 = vld [vmem:[%s234_s11] sm:$0xff]  ;;  %v737_v5 = vpack.c.bf16 %v1145_v3, %v1143_v2  ;;  %v1151_v6 = vld [vmem:[%s234_s11 + $0x10] sm:$0xff]  ;;  %v1153_v7 = vld [vmem:[%s234_s11 + $0x28] sm:$0xff]  ;;  %vm425_vm1 = vcmask 130048   ;;  %s260_s10 = scalar_lea.vmem [#allocation5], %s710_s28  ;;  %s736_s28 = sshll.u32 %s971_s21, 10 }
  0x3c   : > { %502 = vmatprep.mubr.f32.mxu1 %v984_v0  ;;  %818 = vset.pattern.permute.xlu1 %v985_v1  ;;  %v1155_v8 = vld [vmem:[%s234_s11 + $0x38] sm:$0xff]  ;;  %v739_v9 = vpack.c.bf16 %v1151_v6, %v1147_v4  ;;  %v1161_v11 = vld [vmem:[%s234_s11 + $0x20] sm:$0xff]  ;;  %v1163_v12 = vld [vmem:[%s234_s11 + $0x30] sm:$0xff]  ;;  %s615_s11 = sshll.u32 %s260_s10, 4  ;;  %s1220_s16 = scalar_lea.hbm %s1277_s5, %s736_s28  ;;  %s1222_s11 = int_to_ptr.vmem [resolvable:$true] %s615_s11 }
  0x3d   : > { %v741_v10 = vpack.c.bf16 %v1155_v8, %v1153_v7  ;;  %738 = vmatprep.subr.bf16.mxu0 %v737_v5  ;;  %v269_v13 = vld [vmem:[%s1274_s2] sm:$0xff]  ;;  %v743_v14 = vpack.c.bf16 %v1163_v12, %v1161_v11  ;;  %v270_v15 = vld [vmem:[%s1274_s2 + $0x8] sm:$0xff]  ;;  %v273_v17 = vld [vmem:[%s1276_s4 + $0x10] sm:$0xff]  ;;  %s600_s21 = scalar_lea.sflag [#allocation4], %s1131_s29  ;;  %s897_s17 = scalar_lea.vmem %s1222_s11, 1024 }
  0x3e   : > { %740 = vmatpush1.bf16.msra.mxu0 %v739_v9  ;;  %285 = vperm.xlu0 %817, %v269_v13   ;;  %v263_v16 = vld [vmem:[%s1273_s1] sm:$0xff]  ;;  %v264_v18 = vld [vmem:[%s1273_s1 + $0x8] sm:$0xff]  ;;  %v274_v21 = vld [vmem:[%s1276_s4 + $0x18] sm:$0xff]  ;;  %p898_p8 = scmp.ne.s32.totalorder %s1222_s11, %s897_s17  ;;  %p1285_p9 = scmp.ne.s32.totalorder %s1281_s6, 0 }
  0x3f   : > { %742 = vmatprep.subr.bf16.mxu0 %v741_v10  ;;  %v271_v19 = vld [vmem:[%s1276_s4] sm:$0xff]  ;;  %v272_v20 = vld [vmem:[%s1276_s4 + $0x8] sm:$0xff]  ;;  %v267_v56 = vld [vmem:[%s1275_s3 + $0x10] sm:$0xff]  ;;  %s986_s24 = smov [#allocation5]  }
  0x40   : > { %407 = vperm.xlu1 %818, %v271_v19   ;;  %v265_v54 = vld [vmem:[%s1275_s3] sm:$0xff]  ;;  %v266_v55 = vld [vmem:[%s1275_s3 + $0x8] sm:$0xff]  ;;  %v268_v57 = vld [vmem:[%s1275_s3 + $0x18] sm:$0xff]  ;;  %p899_p11 = pnand %p898_p8, %p1285_p9  ;;  %s901_s9 = sshll.u32 %s986_s24, 4  ;;  %s902_s9 = int_to_ptr.vmem [resolvable:$false] %s901_s9 }
  0x41   : > { %s903_s12 = scalar_lea.vmem %s902_s9, 2048  ;;  %p904_p6 = scmp.lt.s32.totalorder %s1222_s11, %s902_s9 }
  0x42   : > { %744 = vmatpush1.bf16.msra.mxu0 %v743_v14  ;;  %290 = vperm.xlu0 %817, %v270_v15   ;;  %p900_p0 = pneg %p899_p11  ;;  %p905_p13 = scmp.lt.s32.totalorder %s903_s12, %s897_s17 }
  0x44   : > { %412 = vperm.xlu1 %818, %v272_v20   ;;  %p906_p2 = por %p905_p13, %p904_p6 }
  0x45   : > { %712 = vmatmul.mubr.msk.f32.vlgmr.msra.gmra.mrb[0].mxu0 %vm293_vm0, %v263_v16 }
  0x46   : > { %370 = vmatprep.mubr.f32.mxu0 %v984_v0  ;;  %417 = vperm.xlu0 %817, %v273_v17   ;;  %p907_p5 = pnand %p906_p2, %p900_p0 }
  0x48   : > { %422 = vperm.xlu1 %818, %v274_v21  }
  0x49   : > { %713 = vmatmul.mubr.msk.f32.gmra.mrb[2].mxu0 %vm293_vm0, %v264_v18 }
  0xbd   : > { %v286_v22 = vpop.permute.xlu0 %285 }
  0xbf   : > { %v408_v58 = vpop.permute.xlu1 %407 }
  0xc1   : > { %v291_v28 = vpop.permute.xlu0 %290 }
  0xc3   : > { %v413_v1 = vpop.permute.xlu1 %412 }
  0xc5   : > { %v418_v15 = vpop.permute.xlu0 %417 }
 0x118   : > { %v366_v23 = vpop.f32.mrb[0].mxu0 }
 0x119   : > { %v367_v24 = vadd.f32 %v366_v23, %v286_v22  ;;  %v368_v25 = vpop.f32.mrb[1].mxu0 }
 0x11a   : > { %v369_v26 = vadd.f32 %v368_v25, %v286_v22  ;;  %v423_v22 = vpop.permute.xlu1 %422 }
 0x11b   : > { %v714_v27 = vmul.f32 -1.442695, %v367_v24 }
 0x11c   : > { %v715_v29 = vmul.f32 -1.442695, %v369_v26  ;;  %v372_v30 = vpop.f32.mrb[2].mxu0 }
 0x11d   : > { %819 = vpow2.f32 %v714_v27  ;;  %v373_v31 = vadd.f32 %v372_v30, %v291_v28  ;;  %v374_v32 = vpop.f32.mrb[3].mxu0 }
 0x11e   : > { %821 = vpow2.f32 %v715_v29  ;;  %v375_v33 = vadd.f32 %v374_v32, %v291_v28 }
 0x11f   : > { %v716_v34 = vmul.f32 -1.442695, %v373_v31 }
 0x120   : > { %v717_v35 = vmul.f32 -1.442695, %v375_v33 }
 0x121   : > { %823 = vpow2.f32 %v716_v34 }
 0x122   : > { %825 = vpow2.f32 %v717_v35 }
 0x127   : > { %v820_v36 = vpop.eup %819 }
 0x128   : > { %v822_v37 = vpop.eup %821  ;;  %v389_v38 = vadd.f32 1.0, %v820_v36 }
 0x129   : > { %v390_v39 = vadd.f32 1.0, %v822_v37 }
 0x12a   : > { %827 = vrcp.f32 %v389_v38 }
 0x12b   : > { %v824_v40 = vpop.eup %823  ;;  %829 = vrcp.f32 %v390_v39 }
 0x12c   : > { %v826_v41 = vpop.eup %825  ;;  %v391_v42 = vadd.f32 1.0, %v824_v40 }
 0x12d   : > { %v392_v43 = vadd.f32 1.0, %v826_v41 }
 0x12e   : > { %831 = vrcp.f32 %v391_v42 }
 0x12f   : > { %833 = vrcp.f32 %v392_v43 }
 0x134   : > { %v828_v44 = vpop.eup %827 }
 0x135   : > { %v830_v45 = vpop.eup %829  ;;  %v401_v48 = vmul.f32 %v828_v44, %v367_v24 }
 0x136   : > { %v402_v50 = vmul.f32 %v830_v45, %v369_v26 }
 0x138   : > { %v832_v46 = vpop.eup %831 }
 0x139   : > { %v834_v47 = vpop.eup %833  ;;  %v403_v49 = vmul.f32 %v832_v46, %v373_v31 }
 0x13a   : > { %v404_v51 = vmul.f32 %v834_v47, %v375_v33 }
 0x13b   : > { %v747_v52 = vpack.c.bf16 %v403_v49, %v401_v48 }
 0x13c   : > { %v745_v53 = vpack.c.bf16 %v404_v51, %v402_v50 }
 0x13e   : > { %746 = vmatprep.subr.bf16.mxu1 %v745_v53 }
 0x13f   : > { %748 = vmatpush1.bf16.msra.mxu1 %v747_v52 }
 0x142   : > { %718 = vmatmul.mubr.msk.f32.vlgmr.msra.gmra.mrb[0].mxu1 %vm425_vm1, %v265_v54 }
 0x143   : > { %508 = vmatprep.mubr.f32.mxu1 %v984_v0 }
 0x146   : > { %719 = vmatmul.mubr.msk.f32.gmra.mrb[2].mxu1 %vm425_vm1, %v266_v55 }
 0x147   : > { %514 = vmatprep.mubr.f32.mxu1 %v984_v0 }
 0x14a   : > { %720 = vmatmul.mubr.msk.f32.gmra.mrb[4].mxu1 %vm425_vm1, %v267_v56 }
 0x14b   : > { %520 = vmatprep.mubr.f32.mxu1 %v984_v0 }
 0x14e   : > { %721 = vmatmul.mubr.msk.f32.gmra.mrb[6].mxu1 %vm425_vm1, %v268_v57 }
 0x215   : > { %v504_v59 = vpop.f32.mrb[0].mxu1 }
 0x216   : > { %v505_v60 = vadd.f32 %v504_v59, %v408_v58  ;;  %v506_v61 = vpop.f32.mrb[1].mxu1 }
 0x217   : > { %v507_v62 = vadd.f32 %v506_v61, %v408_v58 }
 0x218   : > { %v722_v63 = vmul.f32 -1.442695, %v505_v60 }
 0x219   : > { %v723_v5 = vmul.f32 -1.442695, %v507_v62  ;;  %v510_v9 = vpop.f32.mrb[2].mxu1 }
 0x21a   : > { %835 = vpow2.f32 %v722_v63  ;;  %v511_v10 = vadd.f32 %v510_v9, %v413_v1  ;;  %v512_v13 = vpop.f32.mrb[3].mxu1 }
 0x21b   : > { %837 = vpow2.f32 %v723_v5  ;;  %v513_v14 = vadd.f32 %v512_v13, %v413_v1 }
 0x21c   : > { %v724_v0 = vmul.f32 -1.442695, %v511_v10 }
 0x21d   : > { %v725_v16 = vmul.f32 -1.442695, %v513_v14  ;;  %v516_v17 = vpop.f32.mrb[4].mxu1 }
 0x21e   : > { %839 = vpow2.f32 %v724_v0  ;;  %v517_v18 = vadd.f32 %v516_v17, %v418_v15  ;;  %v518_v19 = vpop.f32.mrb[5].mxu1 }
 0x21f   : > { %841 = vpow2.f32 %v725_v16  ;;  %v519_v20 = vadd.f32 %v518_v19, %v418_v15 }
 0x220   : > { %v726_v21 = vmul.f32 -1.442695, %v517_v18 }
 0x221   : > { %v727_v23 = vmul.f32 -1.442695, %v519_v20  ;;  %v522_v24 = vpop.f32.mrb[6].mxu1 }
 0x222   : > { %843 = vpow2.f32 %v726_v21  ;;  %v523_v25 = vadd.f32 %v522_v24, %v423_v22  ;;  %v524_v26 = vpop.f32.mrb[7].mxu1 }
 0x223   : > { %845 = vpow2.f32 %v727_v23  ;;  %v525_v27 = vadd.f32 %v524_v26, %v423_v22 }
 0x224   : > { %v836_v28 = vpop.eup %835  ;;  %v728_v29 = vmul.f32 -1.442695, %v523_v25 }
 0x225   : > { %v838_v30 = vpop.eup %837  ;;  %v551_v31 = vadd.f32 1.0, %v836_v28  ;;  %v729_v32 = vmul.f32 -1.442695, %v525_v27 }
 0x226   : > { %v552_v33 = vadd.f32 1.0, %v838_v30  ;;  %847 = vpow2.f32 %v728_v29 }
 0x227   : > { %849 = vrcp.f32 %v551_v31 }
 0x228   : > { %v840_v34 = vpop.eup %839  ;;  %851 = vrcp.f32 %v552_v33 }
 0x229   : > { %v842_v35 = vpop.eup %841  ;;  %v553_v36 = vadd.f32 1.0, %v840_v34  ;;  %853 = vpow2.f32 %v729_v32 }
 0x22a   : > { %v554_v37 = vadd.f32 1.0, %v842_v35 }
 0x22b   : > { %855 = vrcp.f32 %v553_v36 }
 0x22c   : > { %v844_v38 = vpop.eup %843  ;;  %857 = vrcp.f32 %v554_v37 }
 0x22d   : > { %v846_v39 = vpop.eup %845  ;;  %v555_v40 = vadd.f32 1.0, %v844_v38 }
 0x22e   : > { %v556_v41 = vadd.f32 1.0, %v846_v39 }
 0x22f   : > { %859 = vrcp.f32 %v555_v40 }
 0x230   : > { %v848_v42 = vpop.eup %847  ;;  %861 = vrcp.f32 %v556_v41 }
 0x231   : > { %v850_v43 = vpop.eup %849  ;;  %v557_v44 = vadd.f32 1.0, %v848_v42 }
 0x232   : > { %v852_v45 = vpop.eup %851  ;;  %v575_v46 = vmul.f32 %v850_v43, %v505_v60 }
 0x233   : > { %v854_v47 = vpop.eup %853  ;;  %v576_v48 = vmul.f32 %v852_v45, %v507_v62  ;;  %863 = vrcp.f32 %v557_v44 }
 0x234   : > { %v583_v49 = vadd.f32 %v575_v46, %v1147_v4  ;;  %v558_v50 = vadd.f32 1.0, %v854_v47 }
 0x235   : > { %v856_v51 = vpop.eup %855  ;;  %v584_v52 = vadd.f32 %v576_v48, %v1143_v2 }
 0x236   : > { %v858_v53 = vpop.eup %857  ;;  %591 = vst [vmem:[%s260_s10] sm:$0xff] %v583_v49  ;;  %v577_v54 = vmul.f32 %v856_v51, %v511_v10  ;;  %865 = vrcp.f32 %v558_v50 }
 0x237   : > { %592 = vst [vmem:[%s260_s10 + $0x8] sm:$0xff] %v584_v52  ;;  %v578_v55 = vmul.f32 %v858_v53, %v513_v14 }
 0x238   : > { %v585_v56 = vadd.f32 %v577_v54, %v1151_v6 }
 0x239   : > { %v860_v57 = vpop.eup %859  ;;  %v586_v58 = vadd.f32 %v578_v55, %v1145_v3 }
 0x23a   : > { %v862_v59 = vpop.eup %861  ;;  %593 = vst [vmem:[%s260_s10 + $0x10] sm:$0xff] %v585_v56  ;;  %v579_v4 = vmul.f32 %v860_v57, %v517_v18 }
 0x23b   : > { %594 = vst [vmem:[%s260_s10 + $0x18] sm:$0xff] %v586_v58  ;;  %v580_v60 = vmul.f32 %v862_v59, %v519_v20 }
 0x23c   : > { %v587_v2 = vadd.f32 %v579_v4, %v1161_v11 }
 0x23d   : > { %v864_v61 = vpop.eup %863  ;;  %v588_v62 = vadd.f32 %v580_v60, %v1153_v7 }
 0x23e   : > { %595 = vst [vmem:[%s260_s10 + $0x20] sm:$0xff] %v587_v2  ;;  %v581_v63 = vmul.f32 %v864_v61, %v523_v25 }
 0x23f   : > { %596 = vst [vmem:[%s260_s10 + $0x28] sm:$0xff] %v588_v62 }
 0x240   : > { %v866_v6 = vpop.eup %865  ;;  %v589_v3 = vadd.f32 %v581_v63, %v1163_v12 }
 0x241   : > { %v582_v1 = vmul.f32 %v866_v6, %v525_v27 }
 0x242   : > { %597 = vst [vmem:[%s260_s10 + $0x30] sm:$0xff] %v589_v3 }
 0x243   : > { %v590_v7 = vadd.f32 %v582_v1, %v1155_v8 }
 0x245   : > { %598 = vst [vmem:[%s260_s10 + $0x38] sm:$0xff] %v590_v7 }
 0x246   : > { %910 = shalt.err (!%p907_p5)
}
 0x247   : > { %s911_s13 = scalar_lea.hbm %s1220_s16, 1024  ;;  %s915_s27 = scalar_lea.hbm %s1277_s5, 2048 }
 0x248   : > { %p912_p4 = scmp.ne.s32.totalorder %s1220_s16, %s911_s13  ;;  %p916_p12 = scmp.lt.u32.totalorder %s1220_s16, %s1277_s5 }
 0x249   : > { %p917_p1 = scmp.lt.u32.totalorder %s915_s27, %s911_s13  ;;  %p919_p8 = scmp.lt.u32.totalorder %s911_s13, %s1220_s16 }
 0x24a   : > { %p913_p7 = pnand %p912_p4, %p1285_p9 }
 0x24b   : > { %p918_p3 = por %p917_p1, %p916_p12 }
 0x24c   : > { %p914_p10 = pneg %p913_p7 }
 0x24d   : > { %p920_p11 = por %p919_p8, %p918_p3 }
 0x24f   : > { %p921_p0 = pnand %p920_p11, %p914_p10 }
 0x251   : > { %924 = shalt.err (!%p921_p0)
}
 0x252   : > { %s987_s30 = smov 256   ;;  %s988_s14 = smov 16  }
 0x253   : > { %751 = dma.vmem_to_hbm [thread:$0]  (%p1285_p9), %s1222_s11, 1024, %s1220_s16, %s600_s21, %s987_s30, %s987_s30, %s988_s14  }
 0x254 PF: > { %s630_s17 = sand.u32 1, %s959_s18   ;;  %p1286_p6 = scmp.ne.s32.totalorder %s1282_s8, 0 }
 0x255   : > { %p1287_p13 = scmp.ge.s32.totalorder %s979_s23, 2  ;;  %s631_s24 = scalar_lea.sflag [#allocation4], %s630_s17 }
 0x257   : > { %p758_p2 = pnand %p1287_p13, %p1286_p6 }
 0x259   : > { %954 = dma.done.wait (!%p758_p2), %s631_s24, 1024  }
 0x25a   : > { %956 = vsyncadd (!%p758_p2), %s631_s24, 4294966272  ;;  %s21_s23 = sadd.s32 1, %s979_s23   ;;  %s1288_s18 = smov %s963_s19 }
 0x25b   : > { %p18_p5 = scmp.ge.s32.totalorder %s21_s23, 4   ;;  %s1289_s19 = smov %s967_s20 }
 0x25c   : > { %s1290_s20 = smov %s1075_s7  ;;  %s1291_s21 = smov %s975_s22 }
 0x25d   : > { %s1292_s22 = smov %s1294_s26  ;;  %20 = sbr.rel (!%p18_p5) target bundleno = 6 (0x6), region = 85 }
 0x264   :  { %636 = vsyncpa [#allocation3], 1 }
 0x265   :  { %638 = vsyncpa [#allocation3 + $0x1], 1 }
 0x266   :  { %639 = vsyncpa [#allocation4], 1 }
 0x267   :  { %641 = vsyncpa [#allocation4 + $0x1], 1 }

</bundles_post_ra>
